<compile_context>
chip_gen: v6e
topology: v6e:2x2x1
jax: 0.10.0
libtpu: 0.0.40
codegen_flags: <defaults>
</compile_context>

<pallas_src>
import functools

import jax
import jax.numpy as jnp
from jax.experimental import pallas as pl
from jax.experimental.pallas import tpu as pltpu

PAD_OUT = 128  # lane-dense layer-2 width inside the kernel (value + logits + pad)


def ac_net1_kernel(x_ref, w1_ref, b1_ref, w2_ref, b2_ref,
                   probs_ref, value_ref, *, n_actions):
    # x_ref: [tile_b, n_states]; w1_ref: [n_states, H2]; w2_ref: [H2, 128]
    x = x_ref[...]

    # ---- fused layer 1 (critic cols | actor cols | zero pad), bias in-kernel ----
    h = jnp.dot(x, w1_ref[...], preferred_element_type=jnp.float32) + b1_ref[...]
    h = jnp.maximum(h, 0.0)

    # ---- fused block-diagonal layer 2 -> [tile_b, 128] ----
    z = jnp.dot(h.astype(w2_ref.dtype), w2_ref[...],
                preferred_element_type=jnp.float32) + b2_ref[...]
    # lane 0 = value, lanes 1..n_actions = actor logits, remaining lanes = 0.

    # ---- masked, numerically-stable softmax over the actor lanes (f32) ----
    lane = jax.lax.broadcasted_iota(jnp.int32, z.shape, 1)
    actor = (lane >= 1) & (lane <= n_actions)
    logits = jnp.where(actor, z, jnp.float32(-1e30))
    m = jnp.max(logits, axis=-1, keepdims=True)
    e = jnp.exp(logits - m)                      # padding lanes underflow to 0
    denom = jnp.maximum(jnp.sum(e, axis=-1, keepdims=True), jnp.float32(1e-30))
    probs = e * pl.reciprocal(denom, approx=True)

    # ---- narrow outputs: only the useful lanes hit HBM ----
    value_ref[...] = z[:, 0:1].astype(value_ref.dtype)
    probs_ref[...] = probs[:, 1:1 + n_actions].astype(probs_ref.dtype)


def pack_params(p, *, matmul_dtype=jnp.float32):
    """Pack the 8 PyTorch-style tensors into 4 fused matrices.

    Call ONCE per parameter update (not per forward).  Use
    matmul_dtype=jnp.bfloat16 on v6e/v7x (halves x/W DMA bytes, native MXU
    path); keep jnp.float32 on v5e if you care about the last ~1e-3.
    """
    n_states, hidden = p["w1c"].shape
    n_actions = p["w2a"].shape[1]
    assert 1 + n_actions <= PAD_OUT
    h2 = max(128, ((2 * hidden + 127) // 128) * 128)   # 128-aligned fused hidden

    # layer 1: [n_states, h2]   (critic | actor | zero pad)
    w1 = jnp.zeros((n_states, h2), jnp.float32)
    w1 = w1.at[:, :hidden].set(p["w1c"])
    w1 = w1.at[:, hidden:2 * hidden].set(p["w1a"])
    b1 = jnp.zeros((1, h2), jnp.float32)
    b1 = b1.at[:, :hidden].set(p["b1c"])
    b1 = b1.at[:, hidden:2 * hidden].set(p["b1a"])

    # layer 2: block-diagonal [h2, PAD_OUT]; lane 0 = value, 1..n_actions = logits
    w2 = jnp.zeros((h2, PAD_OUT), jnp.float32)
    w2 = w2.at[:hidden, 0].set(p["w2c"][:, 0])
    w2 = w2.at[hidden:2 * hidden, 1:1 + n_actions].set(p["w2a"])
    b2 = jnp.zeros((1, PAD_OUT), jnp.float32)
    b2 = b2.at[0, 0].set(p["b2c"][0, 0])
    b2 = b2.at[0, 1:1 + n_actions].set(p["b2a"][0])

    return dict(w1=w1.astype(matmul_dtype), b1=b1,
                w2=w2.astype(matmul_dtype), b2=b2,
                n_actions=int(n_actions))


@functools.partial(jax.jit, static_argnames=("n_actions", "batch_tile"))
def ac_net1_forward(x, w1, b1, w2, b2, *, n_actions, batch_tile=1024):
    """Fused actor-critic forward on pre-packed weights. Returns (probs, value)."""
    B, n_states = x.shape
    h2 = w1.shape[1]
    x = x.astype(w1.dtype)   # bf16 cast is fused under jit when enabled

    # ---- batch tiling ----
    #  * tiny B: single step (dispatch bound; splitting is pure overhead)
    #  * medium B (>=128): two row tiles so both v7x TensorCores get work
    #  * large B: batch_tile rows per step (sweep 1024-4096 on v7x)
    if B < 128:
        tile_b = B
    elif B <= batch_tile:
        tile_b = ((pl.cdiv(B, 2) + 7) // 8) * 8
    else:
        tile_b = batch_tile
    grid = (pl.cdiv(B, tile_b),)   # ragged tail handled by Pallas (masked writes)

    # Only request extra scoped VMEM when huge tiles would exceed v5e's 16 MiB
    # default (double-buffered x + outputs, plus the resident weights).
    itemsize = w1.dtype.itemsize
    est_vmem = (2 * tile_b * (n_states * itemsize + (1 + n_actions) * 4)
                + (w1.size + w2.size) * itemsize + (b1.size + b2.size) * 4)
    vmem_limit = int(min(est_vmem + (4 << 20), 64 << 20)) if est_vmem > (14 << 20) else None

    probs, value = pl.pallas_call(
        functools.partial(ac_net1_kernel, n_actions=n_actions),
        out_shape=(jax.ShapeDtypeStruct((B, n_actions), jnp.float32),
                   jax.ShapeDtypeStruct((B, 1), jnp.float32)),
        grid=grid,
        in_specs=[
            pl.BlockSpec((tile_b, n_states), lambda i: (i, 0)),   # x tile
            pl.BlockSpec((n_states, h2), lambda i: (0, 0)),       # W1 resident
            pl.BlockSpec((1, h2), lambda i: (0, 0)),              # b1 resident
            pl.BlockSpec((h2, PAD_OUT), lambda i: (0, 0)),        # W2 resident
            pl.BlockSpec((1, PAD_OUT), lambda i: (0, 0)),         # b2 resident
        ],
        out_specs=(
            pl.BlockSpec((tile_b, n_actions), lambda i: (i, 0)),  # probs
            pl.BlockSpec((tile_b, 1), lambda i: (i, 0)),          # value
        ),
        compiler_params=pltpu.CompilerParams(
            dimension_semantics=("parallel",),
            vmem_limit_bytes=vmem_limit),
    )(x, w1, b1, w2, b2)
    return probs, value


def init_params(key, n_states, n_actions, hidden_size):
    """Deterministic PyTorch-Linear-style uniform init: U(-1/sqrt(fan_in), +)."""
    ks = jax.random.split(key, 8)

    def lin(kw, kb, fan_in, fan_out):
        bound = 1.0 / jnp.sqrt(fan_in)
        w = jax.random.uniform(kw, (fan_in, fan_out), jnp.float32, -bound, bound)
        b = jax.random.uniform(kb, (1, fan_out), jnp.float32, -bound, bound)
        return w, b

    w1c, b1c = lin(ks[0], ks[1], n_states, hidden_size)
    w2c, b2c = lin(ks[2], ks[3], hidden_size, 1)
    w1a, b1a = lin(ks[4], ks[5], n_states, hidden_size)
    w2a, b2a = lin(ks[6], ks[7], hidden_size, n_actions)
    return dict(w1c=w1c, b1c=b1c, w2c=w2c, b2c=b2c,
                w1a=w1a, b1a=b1a, w2a=w2a, b2a=b2a)


def reference_forward(x, p):
    """Pure-JAX reference of the PyTorch forward (probs, value)."""
    h_c = jnp.maximum(x @ p["w1c"] + p["b1c"], 0.0)
    value = h_c @ p["w2c"] + p["b2c"]
    h_a = jnp.maximum(x @ p["w1a"] + p["b1a"], 0.0)
    logits = h_a @ p["w2a"] + p["b2a"]
    probs = jax.nn.softmax(logits, axis=1)
    return probs, value


if __name__ == "__main__":
    # Small shapes consistent with the module: batch=8, n_states=16,
    # hidden_size=32, n_actions=8.
    B, n_states, hidden_size, n_actions = 8, 16, 32, 8

    key = jax.random.PRNGKey(0)
    k_x, k_p = jax.random.split(key)
    x = jax.random.normal(k_x, (B, n_states), jnp.float32)
    params = init_params(k_p, n_states, n_actions, hidden_size)
    probs_ref, value_ref = reference_forward(x, params)

    # --- f32 MXU operands (safe on every generation) — tight check ---------
    packed = pack_params(params, matmul_dtype=jnp.float32)   # once per update
    probs, value = ac_net1_forward(x, packed["w1"], packed["b1"],
                                   packed["w2"], packed["b2"],
                                   n_actions=packed["n_actions"])
    jax.block_until_ready((probs, value))
    assert probs.shape == (B, n_actions) and value.shape == (B, 1)
    assert jnp.allclose(value, value_ref, atol=1e-5, rtol=1e-5)
    # probs tolerance loosened slightly for pl.reciprocal(approx=True)
    assert jnp.allclose(probs, probs_ref, atol=5e-3, rtol=5e-3)
    assert jnp.allclose(jnp.sum(probs, axis=1), 1.0, atol=5e-3)

    # --- bf16 MXU operands (recommended default on v6e / v7x) — loose check -
    packed_bf = pack_params(params, matmul_dtype=jnp.bfloat16)
    probs_b, value_b = ac_net1_forward(x, packed_bf["w1"], packed_bf["b1"],
                                       packed_bf["w2"], packed_bf["b2"],
                                       n_actions=packed_bf["n_actions"])
    jax.block_until_ready((probs_b, value_b))
    assert jnp.allclose(probs_b, probs_ref, atol=3e-2, rtol=3e-2)
    assert jnp.allclose(value_b, value_ref, atol=3e-2, rtol=3e-2)

    print("KERNEL_OK")
</pallas_src>

<mosaic_0001>
module attributes {stable_mosaic.version = 11 : i64} {
  func.func @ac_net1_kernel(%arg0: i32, %arg1: memref<8x16xf32, #tpu.memory_space<vmem>>, %arg2: memref<16x128xf32, #tpu.memory_space<vmem>>, %arg3: memref<1x128xf32, #tpu.memory_space<vmem>>, %arg4: memref<128x128xf32, #tpu.memory_space<vmem>>, %arg5: memref<1x128xf32, #tpu.memory_space<vmem>>, %arg6: memref<8x8xf32, #tpu.memory_space<vmem>>, %arg7: memref<8x1xf32, #tpu.memory_space<vmem>>) attributes {dimension_semantics = [#tpu.dimension_semantics<parallel>], iteration_bounds = array<i64: 1>, scalar_prefetch = 0 : i64, scratch_operands = 0 : i64, tpu.core_type = #tpu.core_type<tc>, window_params = [{transform_indices = @transform_0, window_bounds = array<i64: 8, 16>}, {pipeline_mode = #tpu.pipeline_mode<synchronous>, transform_indices = @transform_1, window_bounds = array<i64: 16, 128>}, {pipeline_mode = #tpu.pipeline_mode<synchronous>, transform_indices = @transform_2, window_bounds = array<i64: 1, 128>}, {pipeline_mode = #tpu.pipeline_mode<synchronous>, transform_indices = @transform_3, window_bounds = array<i64: 128, 128>}, {pipeline_mode = #tpu.pipeline_mode<synchronous>, transform_indices = @transform_4, window_bounds = array<i64: 1, 128>}, {transform_indices = @transform_5, window_bounds = array<i64: 8, 8>}, {transform_indices = @transform_6, window_bounds = array<i64: 8, 1>}]} {
    %c0 = arith.constant 0 : index
    %c0_0 = arith.constant 0 : index
    %0 = vector.load %arg1[%c0, %c0_0] : memref<8x16xf32, #tpu.memory_space<vmem>>, vector<8x16xf32>
    %c0_1 = arith.constant 0 : index
    %c0_2 = arith.constant 0 : index
    %1 = vector.load %arg2[%c0_1, %c0_2] : memref<16x128xf32, #tpu.memory_space<vmem>>, vector<16x128xf32>
    %cst = arith.constant dense<0.000000e+00> : vector<8x128xf32>
    %2 = tpu.matmul %0, %1, %cst {dimension_numbers = #tpu.dot_dimension_numbers<[1], [0], [0], [1], [0, 0, 1, 1], [], []>} : vector<8x16xf32>, vector<16x128xf32>, vector<8x128xf32> -> vector<8x128xf32>
    %c0_3 = arith.constant 0 : index
    %c0_4 = arith.constant 0 : index
    %3 = vector.load %arg3[%c0_3, %c0_4] : memref<1x128xf32, #tpu.memory_space<vmem>>, vector<1x128xf32>
    %4 = vector.broadcast %3 : vector<1x128xf32> to vector<8x128xf32>
    %5 = arith.addf %2, %4 : vector<8x128xf32>
    %cst_5 = arith.constant 0.000000e+00 : f32
    %6 = vector.broadcast %cst_5 : f32 to vector<8x128xf32>
    %7 = arith.maximumf %5, %6 : vector<8x128xf32>
    %c0_6 = arith.constant 0 : index
    %c0_7 = arith.constant 0 : index
    %8 = vector.load %arg4[%c0_6, %c0_7] : memref<128x128xf32, #tpu.memory_space<vmem>>, vector<128x128xf32>
    %cst_8 = arith.constant dense<0.000000e+00> : vector<8x128xf32>
    %9 = tpu.matmul %7, %8, %cst_8 {dimension_numbers = #tpu.dot_dimension_numbers<[1], [0], [0], [1], [0, 0, 1, 1], [], []>} : vector<8x128xf32>, vector<128x128xf32>, vector<8x128xf32> -> vector<8x128xf32>
    %c0_9 = arith.constant 0 : index
    %c0_10 = arith.constant 0 : index
    %10 = vector.load %arg5[%c0_9, %c0_10] : memref<1x128xf32, #tpu.memory_space<vmem>>, vector<1x128xf32>
    %11 = vector.broadcast %10 : vector<1x128xf32> to vector<8x128xf32>
    %12 = arith.addf %9, %11 : vector<8x128xf32>
    %13 = tpu.iota {dimensions = array<i32: 1>} : vector<8x128xi32>
    %c1_i32 = arith.constant 1 : i32
    %14 = vector.broadcast %c1_i32 : i32 to vector<8x128xi32>
    %15 = arith.cmpi sge, %13, %14 : vector<8x128xi32>
    %c8_i32 = arith.constant 8 : i32
    %16 = vector.broadcast %c8_i32 : i32 to vector<8x128xi32>
    %17 = arith.cmpi sle, %13, %16 : vector<8x128xi32>
    %18 = arith.andi %15, %17 : vector<8x128xi1>
    %cst_11 = arith.constant -1.000000e+30 : f32
    %19 = vector.broadcast %cst_11 : f32 to vector<8x128xf32>
    %20 = arith.select %18, %12, %19 : vector<8x128xi1>, vector<8x128xf32>
    %cst_12 = arith.constant dense<0xFF800000> : vector<8xf32>
    %21 = vector.multi_reduction <maximumf>, %20, %cst_12 [1] : vector<8x128xf32> to vector<8xf32>
    %22 = vector.shape_cast %21 : vector<8xf32> to vector<8x1xf32>
    %23 = vector.broadcast %22 : vector<8x1xf32> to vector<8x128xf32>
    %24 = arith.subf %20, %23 : vector<8x128xf32>
    %25 = math.exp %24 : vector<8x128xf32>
    %cst_13 = arith.constant dense<0.000000e+00> : vector<8xf32>
    %26 = vector.multi_reduction <add>, %25, %cst_13 [1] : vector<8x128xf32> to vector<8xf32>
    %27 = vector.shape_cast %26 : vector<8xf32> to vector<8x1xf32>
    %cst_14 = arith.constant 1.000000e-30 : f32
    %28 = vector.broadcast %cst_14 : f32 to vector<8x1xf32>
    %29 = arith.maximumf %27, %28 : vector<8x1xf32>
    %30 = tpu.reciprocal %29 {approx = true} : vector<8x1xf32> -> vector<8x1xf32>
    %31 = vector.broadcast %30 : vector<8x1xf32> to vector<8x128xf32>
    %32 = arith.mulf %25, %31 : vector<8x128xf32>
    %33 = vector.extract_strided_slice %12 {offsets = [0, 0], sizes = [8, 1], strides = [1, 1]} : vector<8x128xf32> to vector<8x1xf32>
    %c0_15 = arith.constant 0 : index
    %c0_16 = arith.constant 0 : index
    %34 = vector.load %arg7[%c0_15, %c0_16] : memref<8x1xf32, #tpu.memory_space<vmem>>, vector<8x1xf32>
    tpu.vector_store %arg7[%c0_15, %c0_16], %33 {strides = array<i32>} : memref<8x1xf32, #tpu.memory_space<vmem>>, vector<8x1xf32>,
    %35 = vector.extract_strided_slice %32 {offsets = [0, 1], sizes = [8, 8], strides = [1, 1]} : vector<8x128xf32> to vector<8x8xf32>
    %c0_17 = arith.constant 0 : index
    %c0_18 = arith.constant 0 : index
    %36 = vector.load %arg6[%c0_17, %c0_18] : memref<8x8xf32, #tpu.memory_space<vmem>>, vector<8x8xf32>
    tpu.vector_store %arg6[%c0_17, %c0_18], %35 {strides = array<i32>} : memref<8x8xf32, #tpu.memory_space<vmem>>, vector<8x8xf32>,
    return
  }
  func.func @transform_0(%arg0: i32) -> (i32, i32) {
    %c0_i32 = arith.constant 0 : i32
    %c0_i32_0 = arith.constant 0 : i32
    return %arg0, %c0_i32 : i32, i32
  }
  func.func @transform_1(%arg0: i32) -> (i32, i32) {
    %c0_i32 = arith.constant 0 : i32
    %c0_i32_0 = arith.constant 0 : i32
    %c0_i32_1 = arith.constant 0 : i32
    return %c0_i32, %c0_i32_0 : i32, i32
  }
  func.func @transform_2(%arg0: i32) -> (i32, i32) {
    %c0_i32 = arith.constant 0 : i32
    %c0_i32_0 = arith.constant 0 : i32
    %c0_i32_1 = arith.constant 0 : i32
    return %c0_i32, %c0_i32_0 : i32, i32
  }
  func.func @transform_3(%arg0: i32) -> (i32, i32) {
    %c0_i32 = arith.constant 0 : i32
    %c0_i32_0 = arith.constant 0 : i32
    %c0_i32_1 = arith.constant 0 : i32
    return %c0_i32, %c0_i32_0 : i32, i32
  }
  func.func @transform_4(%arg0: i32) -> (i32, i32) {
    %c0_i32 = arith.constant 0 : i32
    %c0_i32_0 = arith.constant 0 : i32
    %c0_i32_1 = arith.constant 0 : i32
    return %c0_i32, %c0_i32_0 : i32, i32
  }
  func.func @transform_5(%arg0: i32) -> (i32, i32) {
    %c0_i32 = arith.constant 0 : i32
    %c0_i32_0 = arith.constant 0 : i32
    return %arg0, %c0_i32 : i32, i32
  }
  func.func @transform_6(%arg0: i32) -> (i32, i32) {
    %c0_i32 = arith.constant 0 : i32
    %c0_i32_0 = arith.constant 0 : i32
    return %arg0, %c0_i32 : i32, i32
  }
}

</mosaic_0001>

<bundles_post_ra>
// kernel: ac_net1_forward.1
= control target key start
LH: loop header
LB: loop body
LE: loop exit
PB: predicated region body
PF: predicated region fallthrough
CT: control target
= control target key end

     0   :  { %12 = vsyncpa [#allocation3], 0  ;;  %s513_s0 = inlined_call_operand.hbm [shape: f32[8,16], index: 0, kind: input, shape index: {}]   ;;  %s514_s1 = inlined_call_operand.hbm [shape: f32[16,128], index: 1, kind: input, shape index: {}]   ;;  %s515_s2 = inlined_call_operand.vmem [shape: f32[1,128], index: 2, kind: input, shape index: {}]   ;;  %s516_s3 = inlined_call_operand.hbm [shape: f32[128,128], index: 3, kind: input, shape index: {}]   ;;  %s517_s4 = inlined_call_operand.vmem [shape: f32[1,128], index: 4, kind: input, shape index: {}]   ;;  %s518_s5 = inlined_call_operand.hbm [shape: f32[8,8], index: 5, kind: output, shape index: {0}]   ;;  %s519_s6 = inlined_call_operand.vmem [shape: f32[8,1], index: 6, kind: output, shape index: {1}]  }
   0x1   :  { %13 = vsyncpa [#allocation6], 0 }
   0x2   :  { %14 = vsyncpa [#allocation4], 0  ;;  %s448_s21 = smov [#allocation5]  }
   0x3   :  { %s30_s22 = sshll.u32 %s448_s21, 4  ;;  %s31_s22 = int_to_ptr.vmem [resolvable:$true] %s30_s22 }
   0x4   :  { %s370_s23 = scalar_lea.vmem %s31_s22, 256  ;;  %p375_p1 = scmp.lt.s32.totalorder %s31_s22, %s31_s22 }
   0x5   :  { %p371_p0 = scmp.ne.s32.totalorder %s31_s22, %s370_s23  ;;  %p376_p2 = scmp.lt.s32.totalorder %s370_s23, %s370_s23 }
   0x7   :  { %p377_p3 = por %p376_p2, %p375_p1 }
   0x9   :  { %p378_p4 = pnand %p377_p3, %p371_p0 }
   0xb   :  { %381 = shalt.err (!%p378_p4)
}
   0xc   :  { %s449_s24 = smov 128   ;;  %s450_s25 = smov 8  }
   0xd   :  { %36 = dma.hbm_to_vmem [thread:$0]  %s514_s1, 256, %s31_s22, [#allocation6], %s449_s24, %s449_s24, %s450_s25  }
   0xe   :  { %s451_s28 = smov [#allocation2]   ;;  %s452_s30 = smov [#allocation7]  }
   0xf   :  { %s21_s29 = sshll.u32 %s451_s28, 4  ;;  %s44_s7 = sshll.u32 %s452_s30, 4  ;;  %s22_s29 = int_to_ptr.vmem [resolvable:$true] %s21_s29  ;;  %s45_s7 = int_to_ptr.vmem [resolvable:$true] %s44_s7 }
  0x10   :  { %s390_s8 = scalar_lea.vmem %s22_s29, 128  ;;  %p395_p6 = scmp.lt.s32.totalorder %s22_s29, %s22_s29 }
  0x11   :  { %p391_p5 = scmp.ne.s32.totalorder %s22_s29, %s390_s8  ;;  %p396_p7 = scmp.lt.s32.totalorder %s390_s8, %s390_s8 }
  0x13   :  { %p397_p8 = por %p396_p7, %p395_p6 }
  0x15   :  { %p398_p9 = pnand %p397_p8, %p391_p5 }
  0x17   :  { %401 = shalt.err (!%p398_p9)
}
  0x18   :  { %24 = dma.hbm_to_vmem [thread:$0]  %s513_s0, 128, %s22_s29, [#allocation3]  }
  0x19   :  { %s410_s11 = scalar_lea.vmem %s45_s7, 2048  ;;  %p415_p11 = scmp.lt.s32.totalorder %s45_s7, %s45_s7 }
  0x1a   :  { %p411_p10 = scmp.ne.s32.totalorder %s45_s7, %s410_s11  ;;  %p416_p12 = scmp.lt.s32.totalorder %s410_s11, %s410_s11 }
  0x1c   :  { %p417_p13 = por %p416_p12, %p415_p11 }
  0x1e   :  { %p418_p0 = pnand %p417_p13, %p411_p10 }
  0x20   :  { %421 = shalt.err (!%p418_p0)
}
  0x21   :  { %50 = dma.hbm_to_vmem [thread:$0]  %s516_s3, 2048, %s45_s7, [#allocation6], %s449_s24, %s449_s24, %s450_s25  }
  0x22   :  { %442 = dma.done.wait [#allocation3], 128  }
  0x23   :  { %443 = vsyncadd [#allocation3], 4294967168 }
  0x24   :  { %444 = dma.done.wait [#allocation6], 2304  }
  0x25   :  { %445 = vsyncadd [#allocation6], 4294964992  ;;  %v453_v0 = vmov 0.0   ;;  %vm454_vm0 = vmmov 0   ;;  %v64_v1 = vld [vmem:[#allocation5 + $0x8] sm:$0xff]  ;;  %v63_v2 = vld [vmem:[#allocation5] sm:$0xff]  ;;  %v240_v25 = vlaneseq }
  0x26   :  { %307 = vmatprep.subr.mxu0 %v453_v0  ;;  %311 = vmatprep.mubr.msk.f32.mxu0 %vm454_vm0, %v453_v0  ;;  %v62_v3 = vld [vmem:[#allocation2] sm:$0xff]  ;;  %vm72_vm1 = vcmask 130048   ;;  %v162_v4 = vld [vmem:[#allocation7 + $0x78] sm:$0xff]  ;;  %v161_v5 = vld [vmem:[#allocation7 + $0x70] sm:$0xff]  ;;  %vm256_vm4 = vcmask 7168   ;;  %s456_s16 = smov [#allocation8]  }
  0x27   :  { %314 = vmatprep.subr.mxu1 %v453_v0  ;;  %346 = vmatprep.mubr.msk.f32.mxu1 %vm454_vm0, %v453_v0  ;;  %v160_v6 = vld [vmem:[#allocation7 + $0x68] sm:$0xff]  ;;  %v159_v7 = vld [vmem:[#allocation7 + $0x60] sm:$0xff]  ;;  %v158_v8 = vld [vmem:[#allocation7 + $0x58] sm:$0xff]  ;;  %v241_v26 = vand.u32 127, %v240_v25  ;;  %s270_s17 = sshll.u32 %s456_s16, 4  ;;  %vm262_vm6 = vcmask 64512   ;;  %s271_s17 = int_to_ptr.vmem [resolvable:$true] %s270_s17 }
  0x28   :  { %308 = vmatpush3.msra.mxu0 %v64_v1  ;;  %315 = vmatpush3.msra.mxu1 %v162_v4  ;;  %v157_v9 = vld [vmem:[#allocation7 + $0x50] sm:$0xff]  ;;  %v156_v10 = vld [vmem:[#allocation7 + $0x48] sm:$0xff]  ;;  %v155_v11 = vld [vmem:[#allocation7 + $0x40] sm:$0xff]  ;;  %p427_p2 = scmp.lt.s32.totalorder %s271_s17, %s271_s17 }
  0x29   :  { %309 = vmatprep.subr.mxu0 %v453_v0  ;;  %316 = vmatprep.subr.mxu1 %v453_v0  ;;  %v154_v12 = vld [vmem:[#allocation7 + $0x38] sm:$0xff]  ;;  %v153_v13 = vld [vmem:[#allocation7 + $0x30] sm:$0xff]  ;;  %v152_v14 = vld [vmem:[#allocation7 + $0x28] sm:$0xff]  ;;  %vm242_vm2 = vcmp.ge.s32.totalorder %v241_v26, 1  ;;  %vm243_vm3 = vcmp.le.s32.totalorder %v241_v26, 8 }
  0x2a   :  { %310 = vmatpush3.msra.mxu0 %v63_v2  ;;  %317 = vmatpush3.msra.mxu1 %v161_v5  ;;  %v151_v15 = vld [vmem:[#allocation7 + $0x20] sm:$0xff]  ;;  %v150_v16 = vld [vmem:[#allocation7 + $0x18] sm:$0xff]  ;;  %v149_v17 = vld [vmem:[#allocation7 + $0x10] sm:$0xff] }
  0x2b   :  { %312 = vmatmul.mubr.msk.f32.vlgmr.msra.gmra.mxu0 %vm72_vm1, %v62_v3  ;;  %318 = vmatprep.subr.mxu1 %v453_v0  ;;  %v148_v18 = vld [vmem:[#allocation7 + $0x8] sm:$0xff]  ;;  %v147_v19 = vld [vmem:[#allocation7] sm:$0xff]  ;;  %vm244_vm5 = vmand %vm242_vm2, %vm243_vm3 }
  0x2c   :  { %319 = vmatpush3.msra.mxu1 %v160_v6  ;;  %v284_v20 = vld [vmem:[%s515_s2] ss:$0 sm:$0xff] }
  0x2d   :  { %320 = vmatprep.subr.mxu1 %v453_v0  ;;  %v286_v27 = vld [vmem:[%s517_s4] ss:$0 sm:$0xff]  ;;  %s455_s4 = smov 127  }
  0x2e   :  { %321 = vmatpush3.msra.mxu1 %v159_v7 }
  0x2f   :  { %322 = vmatprep.subr.mxu1 %v453_v0 }
  0x30   :  { %323 = vmatpush3.msra.mxu1 %v158_v8 }
  0x31   :  { %324 = vmatprep.subr.mxu1 %v453_v0 }
  0x32   :  { %325 = vmatpush3.msra.mxu1 %v157_v9 }
  0x33   :  { %326 = vmatprep.subr.mxu1 %v453_v0 }
  0x34   :  { %327 = vmatpush3.msra.mxu1 %v156_v10 }
  0x35   :  { %328 = vmatprep.subr.mxu1 %v453_v0 }
  0x36   :  { %329 = vmatpush3.msra.mxu1 %v155_v11 }
  0x37   :  { %330 = vmatprep.subr.mxu1 %v453_v0 }
  0x38   :  { %331 = vmatpush3.msra.mxu1 %v154_v12 }
  0x39   :  { %332 = vmatprep.subr.mxu1 %v453_v0 }
  0x3a   :  { %333 = vmatpush3.msra.mxu1 %v153_v13 }
  0x3b   :  { %334 = vmatprep.subr.mxu1 %v453_v0 }
  0x3c   :  { %335 = vmatpush3.msra.mxu1 %v152_v14 }
  0x3d   :  { %336 = vmatprep.subr.mxu1 %v453_v0 }
  0x3e   :  { %337 = vmatpush3.msra.mxu1 %v151_v15 }
  0x3f   :  { %338 = vmatprep.subr.mxu1 %v453_v0 }
  0x40   :  { %339 = vmatpush3.msra.mxu1 %v150_v16 }
  0x41   :  { %340 = vmatprep.subr.mxu1 %v453_v0 }
  0x42   :  { %341 = vmatpush3.msra.mxu1 %v149_v17 }
  0x43   :  { %342 = vmatprep.subr.mxu1 %v453_v0 }
  0x44   :  { %343 = vmatpush3.msra.mxu1 %v148_v18 }
  0x45   :  { %344 = vmatprep.subr.mxu1 %v453_v0 }
  0x46   :  { %345 = vmatpush3.msra.mxu1 %v147_v19 }
  0xeb   :  { %v142_v21 = vpop.f32.mrf.mxu0 }
  0xec   :  { %v143_v22 = vadd.f32 %v284_v20, %v142_v21 }
  0xed   :  { %v313_v23 = vpop.f32.mrf.mxu0 }
  0xee   :  { %v146_v24 = vmax.f32 %v143_v22, 0.0 }
  0xf0   :  { %347 = vmatmul.mubr.f32.vlgmr.msra.gmra.mxu1 %v146_v24 }
 0x1b0   :  { %v236_v28 = vpop.f32.mrf.mxu1 }
 0x1b1   :  { %v237_v29 = vadd.f32 %v286_v27, %v236_v28 }
 0x1b2   :  { %v348_v30 = vpop.f32.mrf.mxu1 }
 0x1b3   :  { %257 = vst.msk [vmem:[%s519_s6] sm:$0xff] %vm256_vm4, %v237_v29  ;;  %v245_v31 = vsel %vm244_vm5, %v237_v29, -1e+30  ;;  %s422_s6 = scalar_lea.vmem %s271_s17, 128 }
 0x1b4   :  { %246 = vmax.xlane.f32.xlu0 %v245_v31  ;;  %p423_p1 = scmp.ne.s32.totalorder %s271_s17, %s422_s6  ;;  %p428_p3 = scmp.lt.s32.totalorder %s422_s6, %s422_s6 }
 0x1b6   :  { %p429_p4 = por %p428_p3, %p427_p2 }
 0x1b8   :  { %p430_p5 = pnand %p429_p4, %p423_p1 }
 0x23d   :  { %v247_v32 = vpop.xlane.xlu0 %246 }
 0x23e   :  { %v248_v33 = vsub.f32 %v245_v31, %v247_v32 }
 0x240   :  { %v249_v34 = vmul.f32 1.442695, %v248_v33 }
 0x242   :  { %358 = vpow2.f32 %v249_v34 }
 0x24f   :  { %v359_v35 = vpop.eup %358 }
 0x250   :  { %251 = vadd.xlane.f32.xlu0 %v359_v35 }
 0x2d9   :  { %v252_v36 = vpop.xlane.xlu0 %251 }
 0x2da   :  { %v253_v37 = vmax.f32 %v252_v36, 1e-30 }
 0x2dc   :  { %360 = vrcp.f32 %v253_v37 }
 0x2e9   :  { %v361_v38 = vpop.eup %360 }
 0x2ea   :  { %v255_v39 = vmul.f32 %v361_v38, %v359_v35 }
 0x2ec   :  { %259 = vrot.lane.b32.xlu1 %v255_v39, %s455_s4 }
 0x35e   :  { %v260_v40 = vpop.permute.xlu1 %259 }
 0x35f   :  { %263 = vst.msk [vmem:[#allocation8] sm:$0xff] %vm262_vm6, %v260_v40 }
 0x360   :  { %433 = shalt.err (!%p430_p5)
}
 0x361   :  { %273 = dma.vmem_to_hbm [thread:$0]  %s271_s17, 128, %s518_s5, [#allocation4]  }
 0x362   :  { %446 = dma.done.wait [#allocation4], 128  }
 0x363   :  { %447 = vsyncadd [#allocation4], 4294967168 }
 0x364   :  { %281 = vsyncpa [#allocation3], 1 }
 0x365   :  { %282 = vsyncpa [#allocation6], 1 }
 0x366   :  { %283 = vsyncpa [#allocation4], 1 }

</bundles_post_ra>
